<compile_context>
chip_gen: v6e
topology: v6e:2x2x1
jax: 0.10.0
libtpu: 0.0.40
codegen_flags: <defaults>
</compile_context>

<pallas_src>
import jax
import jax.numpy as jnp
from jax import lax
from jax.experimental import pallas as pl
from jax.experimental.pallas import tpu as pltpu


# ----------------------------------------------------------------------------
# Small helpers
# ----------------------------------------------------------------------------
def _largest_divisor_leq(n, cap):
    cap = max(1, min(n, cap))
    for d in range(cap, 0, -1):
        if n % d == 0:
            return d
    return 1


def _round_up(x, m):
    return ((x + m - 1) // m) * m


def _lane_pad(c):
    # a block's minor dim is padded to a multiple of 128 lanes in VMEM
    return max(128, _round_up(c, 128))


def _vmem_limit_bytes():
    # Raise the scoped-VMEM limit (defaults: 16 MiB v5e / 32 MiB v6e,v7x) but stay
    # well under physical VMEM on every chip (64 MiB per TC on v7x).
    try:
        cap = int(pltpu.get_tpu_info().vmem_capacity_bytes)
        return int(min(48 * 1024 * 1024, cap // 2))
    except Exception:
        return None


_TILE_BUDGET_BYTES = 16 * 1024 * 1024   # VMEM budget used by the tiling heuristics


def _pick_up_row_tile(H, W, Cin, Cout, in_itemsize, comp_itemsize):
    two_c = 2 * Cout
    per_row = (
        2 * _round_up(W, 8) * _lane_pad(Cin) * in_itemsize          # input block, double-buffered
        + 2 * 2 * _round_up(W, 8) * _lane_pad(two_c) * comp_itemsize  # output block (2 sub-rows), 2 bufs
        + _round_up(W, 8) * _lane_pad(4 * Cout) * 4                 # f32 matmul result (vregs / spill)
    )
    cap = max(1, int(_TILE_BUDGET_BYTES // max(per_row, 1)))
    return _largest_divisor_leq(H, min(cap, 1024))


def _pick_conv_row_tile(Hc, Wc, chans, Co, in_itemsize, comp_itemsize):
    Ct = sum(chans)
    per_row = (
        2 * _round_up(Wc, 8) * sum(_lane_pad(c) for c in chans) * in_itemsize  # input strips, 2 bufs
        + 2 * _round_up(Wc, 8) * _lane_pad(Co) * comp_itemsize                 # output block, 2 bufs
        + _round_up(Wc + 2, 8) * _lane_pad(Ct) * comp_itemsize                 # padded VMEM scratch
        + _round_up(Wc, 8) * _lane_pad(Co) * 4                                 # f32 accumulator
    )
    cap = max(1, int(_TILE_BUDGET_BYTES // max(per_row, 1)))
    return _largest_divisor_leq(Hc, min(cap, 1024))


# ----------------------------------------------------------------------------
# Kernel 1: transpose-conv (k=2, stride=2) as a row-tiled matmul.
# out[n, o, 2i+di, 2j+dj] = sum_c x[n, c, i, j] * W[c, o, di, dj] + b[o]
# One grid step computes (TH*W, Cin) @ (Cin, 4*Cout) and stores the two di
# sub-rows straight into an (N, H, 2, W, 2*Cout) output; the trailing reshape
# to NHWC (N, 2H, 2W, Cout) is a contiguous, layout-preserving regrouping.
# ----------------------------------------------------------------------------
def _up_transpose_conv(x_nhwc, w_up, b_up, *, row_tile=None, compute_dtype=jnp.float32):
    N, H, W, Cin = x_nhwc.shape
    Cout = int(w_up.shape[1])
    xc = x_nhwc.astype(compute_dtype)
    TH = int(row_tile) if row_tile is not None else _pick_up_row_tile(
        H, W, Cin, Cout, jnp.dtype(compute_dtype).itemsize, jnp.dtype(compute_dtype).itemsize)
    assert H % TH == 0, (H, TH)
    two_c = 2 * Cout

    # columns ordered (di, dj, o)
    wm = jnp.transpose(w_up, (0, 2, 3, 1)).reshape(Cin, 4 * Cout).astype(compute_dtype)
    bm = jnp.tile(b_up, 4).reshape(1, 4 * Cout).astype(jnp.float32)

    def kernel(x_ref, w_ref, b_ref, o_ref):
        # x: (1, TH, W, Cin)  w: (Cin, 4*Cout)  b: (1, 4*Cout)  o: (1, TH, 2, W, 2*Cout)
        x2d = x_ref[0].reshape(TH * W, Cin)
        y = jnp.dot(x2d, w_ref[...], preferred_element_type=jnp.float32) + b_ref[...]
        y = y.astype(o_ref.dtype)
        # di selects the output sub-row; the (dj, o) pair is already laid out so that
        # the later NHWC reshape is free.
        o_ref[0:1, :, 0:1, :, :] = y[:, :two_c].reshape(1, TH, 1, W, two_c)
        o_ref[0:1, :, 1:2, :, :] = y[:, two_c:].reshape(1, TH, 1, W, two_c)

    out5 = pl.pallas_call(
        kernel,
        out_shape=jax.ShapeDtypeStruct((N, H, 2, W, two_c), compute_dtype),
        grid_spec=pltpu.PrefetchScalarGridSpec(
            num_scalar_prefetch=0,
            grid=(N, H // TH),
            in_specs=[
                pl.BlockSpec((1, TH, W, Cin), lambda n, t: (n, t, 0, 0)),
                pl.BlockSpec((Cin, 4 * Cout), lambda n, t: (0, 0)),   # weights stay resident
                pl.BlockSpec((1, 4 * Cout), lambda n, t: (0, 0)),
            ],
            out_specs=pl.BlockSpec((1, TH, 2, W, two_c), lambda n, t: (n, t, 0, 0, 0)),
        ),
        compiler_params=pltpu.CompilerParams(
            dimension_semantics=("parallel", "parallel"),
            vmem_limit_bytes=_vmem_limit_bytes(),
        ),
    )(xc, wm, bm)
    # (N, H, 2, W, 2*Cout) -> (N, 2H, 2W, Cout): contiguous regrouping, no data movement.
    return out5.reshape(N, 2 * H, 2 * W, Cout)


# ----------------------------------------------------------------------------
# Kernel 2: 3x3 conv (padding=1) + bias + ReLU over the channel-concatenation of
# `streams` (1 or 2 NHWC arrays), row-strip tiled.  The concat AND the zero
# padding are built in a VMEM scratch; the strip's one-row halos come from tiny
# precomputed halo arrays (zeros at the image border).  The 9 taps are loaded
# from static Ref views and accumulated in an f32 value (no VMEM accumulator).
# ----------------------------------------------------------------------------
def _conv3x3_relu_fused(streams, w, b, *, row_tile=None,
                        compute_dtype=jnp.float32, out_dtype=None):
    out_dtype = out_dtype or compute_dtype
    N, Hc, Wc = int(streams[0].shape[0]), int(streams[0].shape[1]), int(streams[0].shape[2])
    chans = [int(s.shape[3]) for s in streams]
    Ct = sum(chans)
    Co = int(w.shape[0])
    assert int(w.shape[1]) == Ct, (w.shape, Ct)

    in_itemsize = jnp.dtype(streams[0].dtype).itemsize
    RH = int(row_tile) if row_tile is not None else _pick_conv_row_tile(
        Hc, Wc, chans, Co, in_itemsize, jnp.dtype(compute_dtype).itemsize)
    assert Hc % RH == 0, (Hc, RH)
    n_strips = Hc // RH
    ns = len(streams)

    inputs, in_specs = [], []
    for s in streams:
        C = int(s.shape[3])
        zrow = jnp.zeros((N, 1, Wc, C), s.dtype)
        # row above / below each strip (zeros at the image border) -- tiny arrays
        top = jnp.concatenate([zrow, s[:, RH - 1:Hc - 1:RH]], axis=1)   # (N, n_strips, Wc, C)
        bot = jnp.concatenate([s[:, RH::RH], zrow], axis=1)             # (N, n_strips, Wc, C)
        inputs += [s, top, bot]
        in_specs += [
            pl.BlockSpec((1, RH, Wc, C), lambda n, r: (n, r, 0, 0)),
            pl.BlockSpec((1, 1, Wc, C), lambda n, r: (n, r, 0, 0)),
            pl.BlockSpec((1, 1, Wc, C), lambda n, r: (n, r, 0, 0)),
        ]
    w9 = jnp.transpose(w, (2, 3, 1, 0)).reshape(9, Ct, Co).astype(compute_dtype)  # taps dy*3+dx
    b2 = b.reshape(1, Co).astype(jnp.float32)
    inputs += [w9, b2]
    in_specs += [
        pl.BlockSpec((9, Ct, Co), lambda n, r: (0, 0, 0)),   # resident across the grid
        pl.BlockSpec((1, Co), lambda n, r: (0, 0)),
    ]

    def kernel(*refs):
        w_ref = refs[3 * ns]
        b_ref = refs[3 * ns + 1]
        o_ref = refs[3 * ns + 2]
        xpad_ref = refs[3 * ns + 3]

        # Build the padded + channel-concatenated strip in VMEM (fused pad + concat).
        zcol = jnp.zeros((RH + 2, 1, Ct), compute_dtype)
        xpad_ref[:, 0:1, :] = zcol
        xpad_ref[:, Wc + 1:Wc + 2, :] = zcol
        c0 = 0
        for si in range(ns):
            strip_ref, top_ref, bot_ref = refs[3 * si], refs[3 * si + 1], refs[3 * si + 2]
            cs = chans[si]
            xpad_ref[1:RH + 1, 1:Wc + 1, c0:c0 + cs] = strip_ref[0].astype(compute_dtype)
            xpad_ref[0:1, 1:Wc + 1, c0:c0 + cs] = top_ref[0].astype(compute_dtype)
            xpad_ref[RH + 1:RH + 2, 1:Wc + 1, c0:c0 + cs] = bot_ref[0].astype(compute_dtype)
            c0 += cs

        # 9 shifted matmuls accumulated in an f32 value (kept in vregs when it
        # fits; the compiler spills only if the strip is large).  Each tap reads
        # a static window of the padded strip through a zero-cost Ref view.
        # (For very small channel counts, packing the taps into a single K=9*Ct
        #  matmul would fill the MXU better; kept as separate taps here for
        #  robust lowering across arbitrary Ct/Co.)
        acc = jnp.zeros((RH * Wc, Co), jnp.float32)
        for k in range(9):
            dy, dx = k // 3, k % 3
            patch = xpad_ref[dy:dy + RH, dx:dx + Wc, :].reshape(RH * Wc, Ct)
            acc = acc + jnp.dot(patch, w_ref[k], preferred_element_type=jnp.float32)
        out = jnp.maximum(acc + b_ref[...], 0.0)
        o_ref[...] = out.reshape(1, RH, Wc, Co).astype(o_ref.dtype)

    grid_spec = pltpu.PrefetchScalarGridSpec(
        num_scalar_prefetch=0,
        grid=(N, n_strips),
        in_specs=in_specs,
        out_specs=pl.BlockSpec((1, RH, Wc, Co), lambda n, r: (n, r, 0, 0)),
        scratch_shapes=[
            pltpu.VMEM((RH + 2, Wc + 2, Ct), compute_dtype),   # padded, concatenated strip
        ],
    )
    return pl.pallas_call(
        kernel,
        out_shape=jax.ShapeDtypeStruct((N, Hc, Wc, Co), out_dtype),
        grid_spec=grid_spec,
        compiler_params=pltpu.CompilerParams(
            dimension_semantics=("parallel", "parallel"),
            vmem_limit_bytes=_vmem_limit_bytes(),
        ),
    )(*inputs)


# ----------------------------------------------------------------------------
# Public forward (NCHW in / NCHW out, matches UpConvBlock.forward)
# ----------------------------------------------------------------------------
def upconv_block_forward(params, x_nchw, skip_nchw, *, use_bf16=False,
                         up_row_tile=None, conv_row_tile=None):
    cdt = jnp.bfloat16 if use_bf16 else jnp.float32
    x = jnp.transpose(x_nchw, (0, 2, 3, 1))
    skip = jnp.transpose(skip_nchw, (0, 2, 3, 1))

    up = _up_transpose_conv(x, params["w_up"], params["b_up"],
                            row_tile=up_row_tile, compute_dtype=cdt)      # (N, 2H, 2W, out_ch)
    Hc, Wc = up.shape[1], up.shape[2]
    if skip.shape[1] != Hc or skip.shape[2] != Wc:                        # spatial crop of skip
        skip = skip[:, :Hc, :Wc, :]
    skip = skip.astype(cdt)

    # conv1 + ReLU with the channel concat fused into the kernel
    h = _conv3x3_relu_fused([up, skip], params["w1"], params["b1"],
                            row_tile=conv_row_tile, compute_dtype=cdt, out_dtype=cdt)
    # conv2 + ReLU
    out = _conv3x3_relu_fused([h], params["w2"], params["b2"],
                              row_tile=conv_row_tile, compute_dtype=cdt,
                              out_dtype=jnp.float32)
    return jnp.transpose(out, (0, 3, 1, 2))                               # back to NCHW


# ----------------------------------------------------------------------------
# Pure-JAX reference (NCHW, lax convs) used for correctness check.
# ----------------------------------------------------------------------------
def _ref_forward(params, x, skip):
    w_conv = jnp.flip(params["w_up"], axis=(2, 3)).transpose(1, 0, 2, 3)
    up = lax.conv_general_dilated(
        x, w_conv, window_strides=(1, 1), padding=((1, 1), (1, 1)),
        lhs_dilation=(2, 2), rhs_dilation=(1, 1),
        dimension_numbers=("NCHW", "OIHW", "NCHW"),
    ) + params["b_up"][None, :, None, None]
    if up.shape != skip.shape:
        skip = skip[:, :, :up.shape[2], :up.shape[3]]
    cat = jnp.concatenate([up, skip], axis=1)

    def conv(t, w, b):
        return lax.conv_general_dilated(
            t, w, (1, 1), ((1, 1), (1, 1)),
            dimension_numbers=("NCHW", "OIHW", "NCHW"),
        ) + b[None, :, None, None]

    h = jax.nn.relu(conv(cat, params["w1"], params["b1"]))
    return jax.nn.relu(conv(h, params["w2"], params["b2"]))


if __name__ == "__main__":
    in_ch, out_ch = 8, 4
    N, H, W = 2, 8, 8  # x: (N, in_ch, H, W); skip: (N, in_ch - out_ch, 2H, 2W)

    key = jax.random.PRNGKey(0)
    ks = jax.random.split(key, 8)
    x = jax.random.normal(ks[0], (N, in_ch, H, W), jnp.float32)
    skip = jax.random.normal(ks[1], (N, in_ch - out_ch, 2 * H, 2 * W), jnp.float32)

    params = {
        # ConvTranspose2d weight: (in_ch, out_ch, 2, 2)
        "w_up": 0.1 * jax.random.normal(ks[2], (in_ch, out_ch, 2, 2), jnp.float32),
        "b_up": 0.1 * jax.random.normal(ks[3], (out_ch,), jnp.float32),
        # Conv2d weights: (out_ch, in_ch, 3, 3) and (out_ch, out_ch, 3, 3)
        "w1": 0.1 * jax.random.normal(ks[4], (out_ch, in_ch, 3, 3), jnp.float32),
        "b1": 0.1 * jax.random.normal(ks[5], (out_ch,), jnp.float32),
        "w2": 0.1 * jax.random.normal(ks[6], (out_ch, out_ch, 3, 3), jnp.float32),
        "b2": 0.1 * jax.random.normal(ks[7], (out_ch,), jnp.float32),
    }

    ref = jax.block_until_ready(_ref_forward(params, x, skip))

    # f32, default (VMEM-aware) tiling -- single row strip per image at this size
    out = jax.block_until_ready(upconv_block_forward(params, x, skip))
    assert out.shape == (N, out_ch, 2 * H, 2 * W), out.shape
    err = float(jnp.max(jnp.abs(out - ref)))
    assert jnp.allclose(out, ref, atol=1e-4, rtol=1e-4), err

    # f32, forced multi-strip tiling (exercises the in-kernel halo / row-tiling path)
    out2 = jax.block_until_ready(
        upconv_block_forward(params, x, skip, up_row_tile=2, conv_row_tile=4))
    err2 = float(jnp.max(jnp.abs(out2 - ref)))
    assert jnp.allclose(out2, ref, atol=1e-4, rtol=1e-4), err2

    # bf16 compute path (MXU-friendly), f32 accumulation; looser tolerance
    out3 = jax.block_until_ready(upconv_block_forward(params, x, skip, use_bf16=True))
    err3 = float(jnp.max(jnp.abs(out3 - ref)))
    assert jnp.allclose(out3, ref, atol=5e-2, rtol=5e-2), err3

    print("KERNEL_OK")
</pallas_src>

<mosaic_0001>
module attributes {stable_mosaic.version = 11 : i64} {
  func.func @kernel(%arg0: i32, %arg1: i32, %arg2: memref<1x8x8x8xf32, #tpu.memory_space<vmem>>, %arg3: memref<8x16xf32, #tpu.memory_space<vmem>>, %arg4: memref<1x16xf32, #tpu.memory_space<vmem>>, %arg5: memref<1x8x2x8x8xf32, #tpu.memory_space<vmem>>) attributes {dimension_semantics = [#tpu.dimension_semantics<parallel>, #tpu.dimension_semantics<parallel>], iteration_bounds = array<i64: 2, 1>, scalar_prefetch = 0 : i64, scratch_operands = 0 : i64, tpu.core_type = #tpu.core_type<tc>, window_params = [{transform_indices = @transform_0, window_bounds = array<i64: 1, 8, 8, 8>}, {pipeline_mode = #tpu.pipeline_mode<synchronous>, transform_indices = @transform_1, window_bounds = array<i64: 8, 16>}, {pipeline_mode = #tpu.pipeline_mode<synchronous>, transform_indices = @transform_2, window_bounds = array<i64: 1, 16>}, {transform_indices = @transform_3, window_bounds = array<i64: 1, 8, 2, 8, 8>}]} {
    %c0 = arith.constant 0 : index
    %c0_0 = arith.constant 0 : index
    %c0_1 = arith.constant 0 : index
    %c0_2 = arith.constant 0 : index
    %0 = vector.load %arg2[%c0, %c0_0, %c0_1, %c0_2] : memref<1x8x8x8xf32, #tpu.memory_space<vmem>>, vector<1x8x8x8xf32>
    %1 = vector.shape_cast %0 : vector<1x8x8x8xf32> to vector<8x8x8xf32>
    %2 = vector.shape_cast %1 : vector<8x8x8xf32> to vector<64x8xf32>
    %c0_3 = arith.constant 0 : index
    %c0_4 = arith.constant 0 : index
    %3 = vector.load %arg3[%c0_3, %c0_4] : memref<8x16xf32, #tpu.memory_space<vmem>>, vector<8x16xf32>
    %cst = arith.constant dense<0.000000e+00> : vector<64x16xf32>
    %4 = tpu.matmul %2, %3, %cst {dimension_numbers = #tpu.dot_dimension_numbers<[1], [0], [0], [1], [0, 0, 1, 1], [], []>} : vector<64x8xf32>, vector<8x16xf32>, vector<64x16xf32> -> vector<64x16xf32>
    %c0_5 = arith.constant 0 : index
    %c0_6 = arith.constant 0 : index
    %5 = vector.load %arg4[%c0_5, %c0_6] : memref<1x16xf32, #tpu.memory_space<vmem>>, vector<1x16xf32>
    %6 = vector.broadcast %5 : vector<1x16xf32> to vector<64x16xf32>
    %7 = arith.addf %4, %6 : vector<64x16xf32>
    %8 = vector.extract_strided_slice %7 {offsets = [0, 0], sizes = [64, 8], strides = [1, 1]} : vector<64x16xf32> to vector<64x8xf32>
    %9 = vector.shape_cast %8 : vector<64x8xf32> to vector<1x8x1x8x8xf32>
    %c0_7 = arith.constant 0 : index
    %c0_8 = arith.constant 0 : index
    %c0_9 = arith.constant 0 : index
    %c0_10 = arith.constant 0 : index
    %c0_11 = arith.constant 0 : index
    %10 = vector.load %arg5[%c0_7, %c0_8, %c0_9, %c0_10, %c0_11] : memref<1x8x2x8x8xf32, #tpu.memory_space<vmem>>, vector<1x8x1x8x8xf32>
    tpu.vector_store %arg5[%c0_7, %c0_8, %c0_9, %c0_10, %c0_11], %9 {strides = array<i32>} : memref<1x8x2x8x8xf32, #tpu.memory_space<vmem>>, vector<1x8x1x8x8xf32>,
    %11 = vector.extract_strided_slice %7 {offsets = [0, 8], sizes = [64, 8], strides = [1, 1]} : vector<64x16xf32> to vector<64x8xf32>
    %12 = vector.shape_cast %11 : vector<64x8xf32> to vector<1x8x1x8x8xf32>
    %c0_12 = arith.constant 0 : index
    %c0_13 = arith.constant 0 : index
    %c1 = arith.constant 1 : index
    %c0_14 = arith.constant 0 : index
    %c0_15 = arith.constant 0 : index
    %13 = vector.load %arg5[%c0_12, %c0_13, %c1, %c0_14, %c0_15] : memref<1x8x2x8x8xf32, #tpu.memory_space<vmem>>, vector<1x8x1x8x8xf32>
    tpu.vector_store %arg5[%c0_12, %c0_13, %c1, %c0_14, %c0_15], %12 {strides = array<i32>} : memref<1x8x2x8x8xf32, #tpu.memory_space<vmem>>, vector<1x8x1x8x8xf32>,
    return
  }
  func.func @transform_0(%arg0: i32, %arg1: i32) -> (i32, i32, i32, i32) {
    %c0_i32 = arith.constant 0 : i32
    %c0_i32_0 = arith.constant 0 : i32
    %c0_i32_1 = arith.constant 0 : i32
    return %arg0, %arg1, %c0_i32, %c0_i32_0 : i32, i32, i32, i32
  }
  func.func @transform_1(%arg0: i32, %arg1: i32) -> (i32, i32) {
    %c0_i32 = arith.constant 0 : i32
    %c0_i32_0 = arith.constant 0 : i32
    %c0_i32_1 = arith.constant 0 : i32
    return %c0_i32, %c0_i32_0 : i32, i32
  }
  func.func @transform_2(%arg0: i32, %arg1: i32) -> (i32, i32) {
    %c0_i32 = arith.constant 0 : i32
    %c0_i32_0 = arith.constant 0 : i32
    %c0_i32_1 = arith.constant 0 : i32
    return %c0_i32, %c0_i32_0 : i32, i32
  }
  func.func @transform_3(%arg0: i32, %arg1: i32) -> (i32, i32, i32, i32, i32) {
    %c0_i32 = arith.constant 0 : i32
    %c0_i32_0 = arith.constant 0 : i32
    %c0_i32_1 = arith.constant 0 : i32
    %c0_i32_2 = arith.constant 0 : i32
    return %arg0, %arg1, %c0_i32, %c0_i32_0, %c0_i32_1 : i32, i32, i32, i32, i32
  }
}

</mosaic_0001>

<bundles_post_ra>
// kernel: tpu_custom_call.1
= control target key start
LH: loop header
LB: loop body
LE: loop exit
PB: predicated region body
PF: predicated region fallthrough
CT: control target
= control target key end

     0   :  { %s1062_s0 = inlined_call_operand.hbm [shape: f32[2,8,8,8], index: 0, kind: input, shape index: {}]   ;;  %s1063_s1 = inlined_call_operand.hbm [shape: f32[8,16], index: 1, kind: input, shape index: {}]   ;;  %s1064_s2 = inlined_call_operand.vmem [shape: f32[1,16], index: 2, kind: input, shape index: {}]   ;;  %s1065_s3 = inlined_call_operand.hbm [shape: f32[2,8,2,8,8], index: 3, kind: output, shape index: {}]  }
   0x1   :  { %1068 = sst [smem:[#allocation11_spill]] %s1063_s1 }
   0x2   :  { %8 = vsyncpa [#allocation3], 0 }
   0x3   :  { %10 = vsyncpa [#allocation3 + $0x1], 0 }
   0x4   :  { %11 = vsyncpa [#allocation6], 0 }
   0x5   :  { %12 = vsyncpa [#allocation4], 0 }
   0x6   :  { %14 = vsyncpa [#allocation4 + $0x1], 0  ;;  %s838_s12 = smov 0   ;;  %s840_s13 = smov 0  }
   0x7   :  { %s842_s14 = smov 0   ;;  %s844_s15 = smov 0  }
   0x8   :  { %s846_s16 = smov 0   ;;  %s848_s17 = smov 0  }
   0x9 LB: > { %s531_s18 = sadd.s32 4294967295, %s808_s17   ;;  %s532_s19 = sadd.s32 4294967294, %s808_s17   ;;  %s808_s17 = sphi %s848_s17, %s20_s17   ;;  %s804_s16 = sphi %s846_s16, %s1086_s16   ;;  %s800_s15 = sphi %s844_s15, %s1085_s15   ;;  %s796_s14 = sphi %s842_s14, %s1084_s14   ;;  %s792_s13 = sphi %s840_s13, %s1083_s13   ;;  %s788_s12 = sphi %s838_s12, %s1082_s12  }
   0xa   : > { %s41_s20 = sadd.s32 1, %s796_s14  ;;  %p48_p0 = scmp.ne.s32.totalorder %s796_s14, %s792_s13 }
   0xb   : > { %p49_p1 = scmp.eq.s32.totalorder %s808_s17, 0  ;;  %p54_p2 = scmp.ne.s32.totalorder %s792_s13, %s788_s12 }
   0xc   : > { %p876_p3 = scmp.eq.s32.totalorder %s531_s18, 0  ;;  %p122_p4 = scmp.eq.s32.totalorder %s531_s18, 1 }
   0xd   : > { %p880_p5 = por %p49_p1, %p48_p0  ;;  %p128_p6 = scmp.eq.s32.totalorder %s532_s19, 1 }
   0xe   : > { %p886_p7 = por %p876_p3, %p54_p2  ;;  %p890_p8 = por %p122_p4, %p48_p0 }
   0xf   : > { %p894_p9 = por %p128_p6, %p54_p2  ;;  %p533_p10 = scmp.ge.s32.totalorder %s808_s17, 1 }
  0x10   : > { %s1071_s23 = scalar_select %p886_p7, 1, 0 }
  0x11   : > { %s1072_s24 = scalar_select %p890_p8, 1, 0 }
  0x12   : > { %s1073_s25 = scalar_select %p894_p9, 1, 0 }
  0x13   : > { %p135_p11 = scmp.lt.s32.totalorder %s808_s17, 3  ;;  %s810_s27 = smov [#allocation5]  }
  0x14   : > { %s148_s28 = sshll.u32 %s810_s27, 4  ;;  %p613_p1 = scmp.lt.s32.totalorder %s808_s17, 2  ;;  %s149_s28 = int_to_ptr.vmem [resolvable:$true] %s148_s28 }
  0x15   : > { %p901_p13 = pnand %p533_p10, %p135_p11  ;;  %s32_s4 = sadd.s32 1, %s804_s16 }
  0x16   : > { %p910_p4 = pnand %p613_p1, %p880_p5  ;;  %p34_p6 = scmp.ge.s32.totalorder %s32_s4, 2 }
  0x17   : > { %p600_p0 = pneg %p901_p13  ;;  %s162_s5 = sand.u32 1, %s796_s14  }
  0x18   : > { %s681_s6 = scalar_lea.vmem %s149_s28, 128  ;;  %p689_p8 = scmp.lt.s32.totalorder %s149_s28, %s149_s28 }
  0x19   : > { %p916_p2 = pnand %p600_p0, %p876_p3  ;;  %p682_p11 = scmp.ne.s32.totalorder %s149_s28, %s681_s6 }
  0x1a   : > { %p690_p5 = scmp.lt.s32.totalorder %s681_s6, %s681_s6 }
  0x1b   : > { %p672_p10 = pneg %p916_p2 }
  0x1c   : > { %p691_p1 = por %p690_p5, %p689_p8 }
  0x1d   : > { %p684_p12 = pnand %p682_p11, %p672_p10 }
  0x1f   : > { %p685_p9 = pneg %p684_p12 }
  0x21   : > { %p692_p7 = pnand %p691_p1, %p685_p9 }
  0x23   : > { %695 = shalt.err (!%p692_p7)
}
  0x24   : > { %s1077_s1 = sld [smem:[#allocation11_spill]]  ;;  %s1088_s4 = smov (%p34_p6, %s32_s4), 0 }
  0x25   : > { %s536_s9 = sshll.u32 %s162_s5, 6  ;;  %s36_s10 = ssub.s32 %s804_s16, %s1088_s4 }
  0x26   : > { %p39_p12 = scmp.eq.s32.totalorder %s36_s10, 0  ;;  %s565_s11 = sshll.u32 %s804_s16, 10 }
  0x27   : > { %s174_s22 = scalar_lea.hbm %s1062_s0, %s565_s11  ;;  %s166_s27 = scalar_lea.vmem [#allocation2], %s536_s9 }
  0x28   : > { %s175_s30 = sshll.u32 %s166_s27, 4  ;;  %s163_s7 = scalar_lea.sflag [#allocation3], %s162_s5  ;;  %s176_s30 = int_to_ptr.vmem [resolvable:$true] %s175_s30 }
  0x29   : > { %s940_s6 = scalar_select %p39_p12, %s796_s14, %s41_s20  }
  0x2a   : > { %603 = dma.hbm_to_vmem [thread:$0]  (!%p916_p2), %s1077_s1, 128, %s149_s28, [#allocation6]  }
  0x2b   : > { %p698_p7 = pneg %p910_p4  ;;  %s709_s28 = scalar_lea.vmem %s176_s30, 1024 }
  0x2c   : > { %p710_p8 = scmp.ne.s32.totalorder %s176_s30, %s709_s28  ;;  %s811_s8 = smov [#allocation2]  }
  0x2d   : > { %s714_s10 = sshll.u32 %s811_s8, 4  ;;  %s715_s10 = int_to_ptr.vmem [resolvable:$false] %s714_s10 }
  0x2e   : > { %p712_p9 = pnand %p710_p8, %p698_p7  ;;  %s716_s1 = scalar_lea.vmem %s715_s10, 2048 }
  0x2f   : > { %p717_p2 = scmp.lt.s32.totalorder %s176_s30, %s715_s10  ;;  %p718_p6 = scmp.lt.s32.totalorder %s716_s1, %s709_s28 }
  0x30   : > { %p713_p0 = pneg %p712_p9 }
  0x31   : > { %p719_p10 = por %p718_p6, %p717_p2 }
  0x33   : > { %p720_p11 = pnand %p719_p10, %p713_p0 }
  0x35   : > { %723 = shalt.err (!%p720_p11)
}
  0x36   : > { %s812_s9 = smov 128   ;;  %s813_s20 = smov 8  }
  0x37   : > { %607 = dma.hbm_to_vmem [thread:$0]  (!%p910_p4), %s174_s22, 1024, %s176_s30, %s163_s7, %s812_s9, %s812_s9, %s813_s20  }
  0x38   : > { %187 = sbr.rel (%p901_p13) target bundleno = 404 (0x194), region = 32  ;;  %s949_s5 = sand.u32 (!%p901_p13), 1, %s792_s13  }
  0x39   : > { %s540_s11 = sshll.u32 (!%p901_p13), %s949_s5, 6  ;;  %s190_s18 = scalar_lea.sflag (!%p901_p13), [#allocation3], %s949_s5 }
  0x3a   : > { %s193_s1 = scalar_lea.vmem (!%p901_p13), [#allocation2], %s540_s11  ;;  %p1078_p5 = scmp.ne.s32.totalorder (!%p901_p13), %s1071_s23, 0 }
  0x3d   : > { %775 = dma.done.wait (%p1078_p5), %s190_s18, 1024  }
  0x3e   : > { %777 = vsyncadd (%p1078_p5), %s190_s18, 4294966272 }
  0x3f   : > { %779 = dma.done.wait (%p876_p3), [#allocation6], 128  }
  0x40   : > { %781 = vsyncadd (%p876_p3), [#allocation6], 4294967168  ;;  %v230_v0 = vld [vmem:[#allocation5] sm:$0xff]  ;;  %vm238_vm0 = vcmask 64512   ;;  %v223_v3 = vld [vmem:[%s193_s1 + $0x8] sm:$0xff]  ;;  %s542_s21 = sshll.u32 %s949_s5, 7 }
  0x41   : > { %v222_v1 = vld [vmem:[%s193_s1] sm:$0xff]  ;;  %576 = vmatprep.subr.mxu0 %v230_v0  ;;  %590 = vmatprep.subr.mxu1 %v230_v0  ;;  %v227_v4 = vld [vmem:[%s193_s1 + $0x28] sm:$0xff]  ;;  %v224_v5 = vld [vmem:[%s193_s1 + $0x10] sm:$0xff]  ;;  %s973_s29 = scalar_lea.vmem [#allocation7], %s542_s21  ;;  %s814_s19 = smov 120  }
  0x42   : > { %v226_v2 = vld [vmem:[%s193_s1 + $0x20] sm:$0xff]  ;;  %577 = vmatpush3.msra.mxu0 %v230_v0  ;;  %591 = vmatpush3.msra.mxu1 %v230_v0  ;;  %v228_v6 = vld [vmem:[%s193_s1 + $0x30] sm:$0xff]  ;;  %v225_v7 = vld [vmem:[%s193_s1 + $0x18] sm:$0xff]  ;;  %s566_s22 = sshll.u32 %s800_s15, 11  ;;  %s434_s27 = sshll.u32 %s973_s29, 4  ;;  %s1010_s27 = int_to_ptr.vmem [resolvable:$true] %s434_s27 }
  0x43   : > { %578 = vmatprep.mubr.msk.f32.mxu0 %vm238_vm0, %v222_v1  ;;  %584 = vmatprep.mubr.msk.f32.mxu1 %vm238_vm0, %v226_v2  ;;  %v229_v8 = vld [vmem:[%s193_s1 + $0x38] sm:$0xff]  ;;  %v543_v9 = vld [vmem:[%s1064_s2] ss:$0 sm:$0xff]  ;;  %s1008_s28 = scalar_lea.hbm %s1065_s3, %s566_s22  ;;  %s418_s15 = scalar_lea.sflag [#allocation4], %s949_s5 }
  0x44   : > { %579 = vmatmul.mubr.msk.f32.vlgmr.msra.gmra.mxu0 %vm238_vm0, %v223_v3  ;;  %585 = vmatmul.mubr.msk.f32.vlgmr.msra.gmra.mxu1 %vm238_vm0, %v227_v4  ;;  %s724_s8 = scalar_lea.vmem %s1010_s27, 2048  ;;  %p1079_p13 = scmp.ne.s32.totalorder %s1072_s24, 0 }
  0x45   : > { %581 = vmatprep.mubr.msk.f32.mxu0 %vm238_vm0, %v224_v5  ;;  %587 = vmatprep.mubr.msk.f32.mxu1 %vm238_vm0, %v228_v6  ;;  %p725_p3 = scmp.ne.s32.totalorder %s1010_s27, %s724_s8  ;;  %s815_s10 = smov [#allocation7]  }
  0x46   : > { %s728_s9 = sshll.u32 %s815_s10, 4  ;;  %s729_s9 = int_to_ptr.vmem [resolvable:$false] %s728_s9 }
  0x47   : > { %p726_p4 = pnand %p725_p3, %p1079_p13  ;;  %s730_s20 = scalar_lea.vmem %s729_s9, 4096 }
  0x48   : > { %582 = vmatmul.mubr.msk.f32.gmra.mxu0 %vm238_vm0, %v225_v7  ;;  %588 = vmatmul.mubr.msk.f32.gmra.mxu1 %vm238_vm0, %v229_v8  ;;  %p731_p12 = scmp.lt.s32.totalorder %s1010_s27, %s729_s9  ;;  %p732_p7 = scmp.lt.s32.totalorder %s730_s20, %s724_s8 }
  0x49   : > { %p727_p1 = pneg %p726_p4 }
  0x4a   : > { %p733_p8 = por %p732_p7, %p731_p12 }
  0x4c   : > { %p734_p9 = pnand %p733_p8, %p727_p1 }
 0x104   : > { %v580_v10 = vpop.f32.mrf.mxu0  ;;  %v586_v11 = vpop.f32.mrf.mxu1 }
 0x105   : > { %v335_v12 = vadd.f32 %v580_v10, %v543_v9  ;;  %v355_v13 = vadd.f32 %v586_v11, %v543_v9 }
 0x106   : > { %v329_v14 = vpop.f32.mrf.mxu0  ;;  %v349_v15 = vpop.f32.mrf.mxu1 }
 0x107   : > { %369 = vst.msk [vmem:[%s973_s29 + $0x10] sm:$0xff] %vm238_vm0, %v335_v12  ;;  %373 = vst.msk [vmem:[%s973_s29 + $0x50] sm:$0xff] %vm238_vm0, %v355_v13  ;;  %v330_v16 = vadd.f32 %v543_v9, %v329_v14  ;;  %v350_v17 = vadd.f32 %v543_v9, %v349_v15  ;;  %394 = vrot.lane.b32.xlu1 %v355_v13, %s814_s19  ;;  %386 = vrot.lane.b32.xlu0 %v335_v12, %s814_s19 }
 0x108   : > { %v583_v18 = vpop.f32.mrf.mxu0  ;;  %v589_v19 = vpop.f32.mrf.mxu1 }
 0x109   : > { %368 = vst.msk [vmem:[%s973_s29] sm:$0xff] %vm238_vm0, %v330_v16  ;;  %372 = vst.msk [vmem:[%s973_s29 + $0x40] sm:$0xff] %vm238_vm0, %v350_v17  ;;  %v345_v20 = vadd.f32 %v583_v18, %v543_v9  ;;  %v365_v21 = vadd.f32 %v589_v19, %v543_v9 }
 0x10a   : > { %v339_v22 = vpop.f32.mrf.mxu0  ;;  %v359_v23 = vpop.f32.mrf.mxu1 }
 0x10b   : > { %371 = vst.msk [vmem:[%s973_s29 + $0x30] sm:$0xff] %vm238_vm0, %v345_v20  ;;  %v340_v24 = vadd.f32 %v543_v9, %v339_v22  ;;  %390 = vrot.lane.b32.xlu1 %v345_v20, %s814_s19  ;;  %384 = vrot.lane.b32.xlu0 %v330_v16, %s814_s19  ;;  %375 = vst.msk [vmem:[%s973_s29 + $0x70] sm:$0xff] %vm238_vm0, %v365_v21  ;;  %v360_v25 = vadd.f32 %v543_v9, %v359_v23 }
 0x10d   : > { %370 = vst.msk [vmem:[%s973_s29 + $0x20] sm:$0xff] %vm238_vm0, %v340_v24  ;;  %374 = vst.msk [vmem:[%s973_s29 + $0x60] sm:$0xff] %vm238_vm0, %v360_v25 }
 0x10f   : > { %388 = vrot.lane.b32.xlu1 %v340_v24, %s814_s19  ;;  %392 = vrot.lane.b32.xlu0 %v350_v17, %s814_s19 }
 0x113   : > { %398 = vrot.lane.b32.xlu1 %v365_v21, %s814_s19  ;;  %396 = vrot.lane.b32.xlu0 %v360_v25, %s814_s19 }
 0x179   : > { %v395_v26 = vpop.permute.xlu1 %394  ;;  %v387_v27 = vpop.permute.xlu0 %386 }
 0x17a   : > { %557 = vst.msk [vmem:[%s973_s29 + $0x58] sm:$0xff] %vm238_vm0, %v395_v26  ;;  %553 = vst.msk [vmem:[%s973_s29 + $0x18] sm:$0xff] %vm238_vm0, %v387_v27 }
 0x17d   : > { %v391_v28 = vpop.permute.xlu1 %390  ;;  %v385_v29 = vpop.permute.xlu0 %384 }
 0x17e   : > { %555 = vst.msk [vmem:[%s973_s29 + $0x38] sm:$0xff] %vm238_vm0, %v391_v28  ;;  %552 = vst.msk [vmem:[%s973_s29 + $0x8] sm:$0xff] %vm238_vm0, %v385_v29 }
 0x181   : > { %v389_v30 = vpop.permute.xlu1 %388  ;;  %v393_v31 = vpop.permute.xlu0 %392 }
 0x182   : > { %554 = vst.msk [vmem:[%s973_s29 + $0x28] sm:$0xff] %vm238_vm0, %v389_v30  ;;  %556 = vst.msk [vmem:[%s973_s29 + $0x48] sm:$0xff] %vm238_vm0, %v393_v31 }
 0x185   : > { %v399_v32 = vpop.permute.xlu1 %398  ;;  %v397_v33 = vpop.permute.xlu0 %396 }
 0x186   : > { %559 = vst.msk [vmem:[%s973_s29 + $0x78] sm:$0xff] %vm238_vm0, %v399_v32  ;;  %558 = vst.msk [vmem:[%s973_s29 + $0x68] sm:$0xff] %vm238_vm0, %v397_v33 }
 0x187   : > { %737 = shalt.err (!%p734_p9)
}
 0x188   : > { %s738_s11 = scalar_lea.hbm %s1008_s28, 2048  ;;  %s742_s21 = scalar_lea.hbm %s1065_s3, 4096 }
 0x189   : > { %p739_p0 = scmp.ne.s32.totalorder %s1008_s28, %s738_s11  ;;  %p743_p10 = scmp.lt.s32.totalorder %s1008_s28, %s1065_s3 }
 0x18a   : > { %p744_p11 = scmp.lt.s32.totalorder %s742_s21, %s738_s11 }
 0x18b   : > { %p740_p2 = pnand %p739_p0, %p1079_p13 }
 0x18c   : > { %p745_p5 = por %p744_p11, %p743_p10 }
 0x18d   : > { %p741_p6 = pneg %p740_p2 }
 0x18f   : > { %p746_p3 = pnand %p745_p5, %p741_p6 }
 0x191   : > { %749 = shalt.err (!%p746_p3)
}
 0x192   : > { %s816_s29 = smov 128   ;;  %s817_s19 = smov 8  }
 0x193   : > { %598 = dma.vmem_to_hbm [thread:$0]  (%p1079_p13), %s1010_s27, 2048, %s1008_s28, %s418_s15, %s816_s29, %s816_s29, %s817_s19  }
 0x194 PF: > { %s449_s22 = sand.u32 1, %s788_s12   ;;  %p1080_p4 = scmp.ne.s32.totalorder %s1073_s25, 0 }
 0x195   : > { %p1081_p1 = scmp.ge.s32.totalorder %s808_s17, 2  ;;  %s450_s30 = scalar_lea.sflag [#allocation4], %s449_s22 }
 0x197   : > { %p609_p12 = pnand %p1081_p1, %p1080_p4 }
 0x199   : > { %p610_p7 = pneg %p609_p12 }
 0x19b   : > { %783 = dma.done.wait (%p610_p7), %s450_s30, 2048  }
 0x19c   : > { %785 = vsyncadd (%p610_p7), %s450_s30, 4294965248  ;;  %s20_s17 = sadd.s32 1, %s808_s17   ;;  %s1082_s12 = smov %s792_s13 }
 0x19d   : > { %p17_p8 = scmp.ge.s32.totalorder %s20_s17, 4   ;;  %s1083_s13 = smov %s796_s14 }
 0x19e   : > { %s1084_s14 = smov %s940_s6  ;;  %s1085_s15 = smov %s804_s16 }
 0x19f   : > { %s1086_s16 = smov %s1088_s4  ;;  %19 = sbr.rel (!%p17_p8) target bundleno = 9 (0x9), region = 82 }
 0x1a4   :  { %455 = vsyncpa [#allocation3], 1 }
 0x1a5   :  { %457 = vsyncpa [#allocation3 + $0x1], 1 }
 0x1a6   :  { %458 = vsyncpa [#allocation6], 1 }
 0x1a7   :  { %459 = vsyncpa [#allocation4], 1 }
 0x1a8   :  { %461 = vsyncpa [#allocation4 + $0x1], 1 }

</bundles_post_ra>
